<compile_context>
chip_gen: v5e
topology: v5e:2x2
jax: 0.10.0
libtpu: 0.0.40
codegen_flags: <defaults>
</compile_context>

<pallas_src>
import numpy as np

import jax
import jax.numpy as jnp
from jax import lax
from jax.experimental import pallas as pl
from jax.experimental.pallas import tpu as pltpu


def _round_up(x, m):
    return ((x + m - 1) // m) * m


# ----------------------------------------------------------------------------
# Fused whole-block kernel: one grid step == one Conv+BN+ReLU layer.
# ----------------------------------------------------------------------------
def _make_block_kernel(cout, cmax, wp, base, l_compute, inv_count, eps):
    # Tap t = dh*3 + dw reads act[:, start_t : start_t + l_compute]; output
    # position q (== n*F + h*Wp + j) then sees input offset (dh-1, dw-1).
    tap_starts = tuple(base + (dh - 1) * wp + (dw - 1)
                       for dh in range(3) for dw in range(3))

    def kernel(x_ref, w_ref, b_ref, g_ref, be_ref, mask_ref, o_ref, act_ref):
        # x_ref    : (cmax, A)          input slab (consumed on layer 0 only)
        # w_ref    : (1, 9*cout, cmax)  this layer's per-tap weights
        # b_ref, g_ref, be_ref : (1, cout, 1)   bias / gamma / beta
        # mask_ref : (1, Lc)            1.0 on real (non-pad) pixel columns
        # o_ref    : (cout, Lc)         final-layer output slab
        # act_ref  : (cmax, A) VMEM     resident activation slab across layers
        @pl.when(pl.program_id(0) == 0)
        def _load_input():
            act_ref[...] = x_ref[...]

        wl = w_ref[0]                                    # (9*cout, cmax)
        bias = b_ref[0]                                  # (cout, 1)

        # ---- 3x3 conv: 9 accumulated matmuls, batched over all images along
        #      the lane axis; no im2col / cols buffer is materialized.
        y = jnp.zeros((cout, l_compute), jnp.float32)
        for t, s in enumerate(tap_starts):
            wt = wl[t * cout:(t + 1) * cout, :]          # (cout, cmax)
            xs = act_ref[:, s:s + l_compute]             # (cmax, Lc)
            y = y + jnp.dot(wt, xs, preferred_element_type=jnp.float32)
        y = y + bias

        # ---- BatchNorm2d batch statistics (training mode), two-pass, with a
        #      single hoisted mask broadcast.
        mb = jnp.broadcast_to(mask_ref[...], (cout, l_compute))
        ym = y * mb
        mean = jnp.sum(ym, axis=1, keepdims=True) * inv_count      # (cout, 1)
        cen = ym - mean * mb                                       # 0 on pads
        var = jnp.sum(cen * cen, axis=1, keepdims=True) * inv_count
        scale = g_ref[0] * lax.rsqrt(var + eps)
        shift = be_ref[0] - mean * scale

        # ---- normalize + affine + ReLU; zero pad/guard columns so the slab
        #      is directly the next layer's input.
        out = jnp.maximum(y * scale + shift, 0.0) * mb

        # Lane-aligned dense stores (base and Lc are multiples of 128).
        act_ref[0:cout, base:base + l_compute] = out     # next layer's input
        o_ref[...] = out                                 # revisited block;
        #                                  only the last layer reaches HBM

    return kernel


# ----------------------------------------------------------------------------
# ConvBlock.forward
# ----------------------------------------------------------------------------
def conv_block_forward(x_nchw, params, eps=1e-5):
    """x_nchw: (N, Cin, H, W) like PyTorch; returns (N, Cout, H, W)."""
    n, cin0, h, w = x_nchw.shape
    num_layers = len(params)
    cout = params[0][0].shape[-1]
    cmax = max(cin0, cout)

    # Lane-dense padded-row width: smallest wp >= w+2 with h*wp % 128 == 0.
    wp = w + 2
    while (h * wp) % 128 != 0:
        wp += 1
    l_out = h * wp                        # per-image interior width
    gap = _round_up(wp + 1, 128)          # inter-image / leading guard
    f = l_out + gap                       # per-image segment (mult. of 128)
    base = gap                            # slab write offset (mult. of 128)
    a = base + n * f                      # slab width (mult. of 128)
    l_compute = (n - 1) * f + l_out       # computed columns (mult. of 128)

    # ---- input slab (cmax, a): column base + n*f + hh*wp + j holds
    #      x[n, c, hh, j-1] for j in [1, w], zero everywhere else.
    x = x_nchw.astype(jnp.float32)
    xp = jnp.pad(x, ((0, 0), (0, 0), (0, 0), (1, wp - w - 1)))
    xp = xp.reshape(n, cin0, l_out)
    xp = jnp.pad(xp, ((0, 0), (0, cmax - cin0), (0, f - l_out)))
    slab = xp.transpose(1, 0, 2).reshape(cmax, n * f)
    slab = jnp.pad(slab, ((0, 0), (base, a - base - n * f)))

    # ---- stack per-layer parameters so one pallas_call streams them per step
    w_l, b_l, g_l, be_l = [], [], [], []
    for (wgt, b, gamma, beta) in params:
        cin_l = wgt.shape[2]
        # HWIO (3,3,cin,cout) -> (9, cout, cin) -> zero-pad cin to cmax
        wt = jnp.transpose(wgt, (0, 1, 3, 2)).reshape(9, cout, cin_l)
        wt = jnp.pad(wt, ((0, 0), (0, 0), (0, cmax - cin_l)))
        w_l.append(wt.reshape(9 * cout, cmax))
        b_l.append(b.reshape(cout, 1))
        g_l.append(gamma.reshape(cout, 1))
        be_l.append(beta.reshape(cout, 1))
    wstk = jnp.stack(w_l)                 # (L, 9*cout, cmax)
    bstk = jnp.stack(b_l)                 # (L, cout, 1)
    gstk = jnp.stack(g_l)
    bestk = jnp.stack(be_l)

    # ---- mask over computed columns: 1.0 on real pixels only
    q = np.arange(l_compute)
    r = q % f
    j = r % wp
    mask_np = ((r < l_out) & (j >= 1) & (j <= w)).astype(np.float32)
    mask = jnp.asarray(mask_np).reshape(1, l_compute)

    kernel = _make_block_kernel(cout, cmax, wp, base, l_compute,
                                1.0 / float(n * h * w), float(eps))

    out_slab = pl.pallas_call(
        kernel,
        out_shape=jax.ShapeDtypeStruct((cout, l_compute), jnp.float32),
        grid=(num_layers,),
        in_specs=[
            pl.BlockSpec((cmax, a), lambda l: (0, 0)),
            pl.BlockSpec((1, 9 * cout, cmax), lambda l: (l, 0, 0)),
            pl.BlockSpec((1, cout, 1), lambda l: (l, 0, 0)),
            pl.BlockSpec((1, cout, 1), lambda l: (l, 0, 0)),
            pl.BlockSpec((1, cout, 1), lambda l: (l, 0, 0)),
            pl.BlockSpec((1, l_compute), lambda l: (0, 0)),
        ],
        out_specs=pl.BlockSpec((cout, l_compute), lambda l: (0, 0)),
        scratch_shapes=[pltpu.VMEM((cmax, a), jnp.float32)],
        compiler_params=pltpu.CompilerParams(
            dimension_semantics=("arbitrary",)),   # layers are sequential
    )(slab, wstk, bstk, gstk, bestk, mask)

    # ---- extract (N, Cout, H, W) from the slab layout
    o = jnp.pad(out_slab, ((0, 0), (0, n * f - l_compute)))
    o = o.reshape(cout, n, f)[:, :, :l_out]
    o = o.reshape(cout, n, h, wp)[:, :, :, 1:w + 1]
    return jnp.transpose(o, (1, 0, 2, 3))


# ----------------------------------------------------------------------------
# Pure-JAX reference (for the correctness check) and parameter init.
# ----------------------------------------------------------------------------
def _reference_forward(x_nchw, params, eps=1e-5):
    x = x_nchw.astype(jnp.float32)
    for (wgt, b, gamma, beta) in params:
        y = jax.lax.conv_general_dilated(
            x, wgt, window_strides=(1, 1), padding=((1, 1), (1, 1)),
            dimension_numbers=("NCHW", "HWIO", "NCHW"),
            precision=jax.lax.Precision.HIGHEST)
        y = y + b[None, :, None, None]
        mean = jnp.mean(y, axis=(0, 2, 3), keepdims=True)
        var = jnp.mean(jnp.square(y - mean), axis=(0, 2, 3), keepdims=True)
        y = (y - mean) * jax.lax.rsqrt(var + eps)
        y = y * gamma[None, :, None, None] + beta[None, :, None, None]
        x = jnp.maximum(y, 0.0)
    return x


def init_params(key, in_features, out_features, num_conv):
    feats = [in_features] + [out_features] * num_conv
    params = []
    for i in range(num_conv):
        key, k1, k2, k3, k4 = jax.random.split(key, 5)
        cin, cout = feats[i], feats[i + 1]
        bound = 1.0 / (cin * 9) ** 0.5            # torch Conv2d default init
        wgt = jax.random.uniform(k1, (3, 3, cin, cout), jnp.float32,
                                 -bound, bound)   # HWIO
        b = jax.random.uniform(k2, (cout,), jnp.float32, -bound, bound)
        gamma = 1.0 + 0.1 * jax.random.normal(k3, (cout,), jnp.float32)
        beta = 0.1 * jax.random.normal(k4, (cout,), jnp.float32)
        params.append((wgt, b, gamma, beta))
    return params


if __name__ == "__main__":
    key = jax.random.PRNGKey(0)
    in_features, out_features, num_conv = 4, 8, 2
    N, H, W = 2, 16, 16

    kx, kp = jax.random.split(key)
    x = jax.random.normal(kx, (N, in_features, H, W), jnp.float32)
    params = init_params(kp, in_features, out_features, num_conv)

    out = jax.jit(conv_block_forward)(x, params)
    jax.block_until_ready(out)
    assert out.shape == (N, out_features, H, W)

    ref = jax.jit(_reference_forward)(x, params)
    err = float(jnp.max(jnp.abs(out - ref)))
    assert bool(jnp.allclose(out, ref, atol=5e-4, rtol=5e-4)), (
        f"mismatch vs reference, max abs err = {err}")

    print("KERNEL_OK")
</pallas_src>

<mosaic_0001>
module attributes {stable_mosaic.version = 11 : i64} {
  func.func @kernel(%arg0: i32, %arg1: memref<8x1152xf32, #tpu.memory_space<vmem>>, %arg2: memref<1x72x8xf32, #tpu.memory_space<vmem>>, %arg3: memref<1x8x1xf32, #tpu.memory_space<vmem>>, %arg4: memref<1x8x1xf32, #tpu.memory_space<vmem>>, %arg5: memref<1x8x1xf32, #tpu.memory_space<vmem>>, %arg6: memref<1x896xf32, #tpu.memory_space<vmem>>, %arg7: memref<8x896xf32, #tpu.memory_space<vmem>>, %arg8: memref<8x1152xf32, #tpu.memory_space<vmem>>) attributes {dimension_semantics = [#tpu.dimension_semantics<arbitrary>], iteration_bounds = array<i64: 2>, scalar_prefetch = 0 : i64, scratch_operands = 1 : i64, tpu.core_type = #tpu.core_type<tc>, window_params = [{pipeline_mode = #tpu.pipeline_mode<synchronous>, transform_indices = @transform_0, window_bounds = array<i64: 8, 1152>}, {transform_indices = @transform_1, window_bounds = array<i64: 1, 72, 8>}, {transform_indices = @transform_2, window_bounds = array<i64: 1, 8, 1>}, {transform_indices = @transform_3, window_bounds = array<i64: 1, 8, 1>}, {transform_indices = @transform_4, window_bounds = array<i64: 1, 8, 1>}, {pipeline_mode = #tpu.pipeline_mode<synchronous>, transform_indices = @transform_5, window_bounds = array<i64: 1, 896>}, {pipeline_mode = #tpu.pipeline_mode<synchronous>, transform_indices = @transform_6, window_bounds = array<i64: 8, 896>}]} {
    %c0_i32 = arith.constant 0 : i32
    %0 = arith.cmpi eq, %arg0, %c0_i32 : i32
    %1 = arith.extui %0 : i1 to i32
    %c0_i32_0 = arith.constant 0 : i32
    %2 = arith.cmpi ne, %1, %c0_i32_0 : i32
    scf.if %2 {
      %c0_42 = arith.constant 0 : index
      %c0_43 = arith.constant 0 : index
      %81 = vector.load %arg1[%c0_42, %c0_43] : memref<8x1152xf32, #tpu.memory_space<vmem>>, vector<8x1152xf32>
      %c0_44 = arith.constant 0 : index
      %c0_45 = arith.constant 0 : index
      %82 = vector.load %arg8[%c0_44, %c0_45] : memref<8x1152xf32, #tpu.memory_space<vmem>>, vector<8x1152xf32>
      tpu.vector_store %arg8[%c0_44, %c0_45], %81 {strides = array<i32>} : memref<8x1152xf32, #tpu.memory_space<vmem>>, vector<8x1152xf32>,
    } else {
    }
    %c0 = arith.constant 0 : index
    %c0_1 = arith.constant 0 : index
    %c0_2 = arith.constant 0 : index
    %3 = vector.load %arg2[%c0, %c0_1, %c0_2] : memref<1x72x8xf32, #tpu.memory_space<vmem>>, vector<1x72x8xf32>
    %4 = vector.shape_cast %3 : vector<1x72x8xf32> to vector<72x8xf32>
    %c0_3 = arith.constant 0 : index
    %c0_4 = arith.constant 0 : index
    %c0_5 = arith.constant 0 : index
    %5 = vector.load %arg3[%c0_3, %c0_4, %c0_5] : memref<1x8x1xf32, #tpu.memory_space<vmem>>, vector<1x8x1xf32>
    %6 = vector.shape_cast %5 : vector<1x8x1xf32> to vector<8x1xf32>
    %cst = arith.constant 0.000000e+00 : f32
    %7 = vector.broadcast %cst : f32 to vector<8x896xf32>
    %8 = vector.extract_strided_slice %4 {offsets = [0, 0], sizes = [8, 8], strides = [1, 1]} : vector<72x8xf32> to vector<8x8xf32>
    %c0_6 = arith.constant 0 : index
    %c103 = arith.constant 103 : index
    %9 = vector.load %arg8[%c0_6, %c103] : memref<8x1152xf32, #tpu.memory_space<vmem>>, vector<8x896xf32>
    %cst_7 = arith.constant dense<0.000000e+00> : vector<8x896xf32>
    %10 = tpu.matmul %8, %9, %cst_7 {dimension_numbers = #tpu.dot_dimension_numbers<[1], [0], [0], [1], [0, 0, 1, 1], [], []>} : vector<8x8xf32>, vector<8x896xf32>, vector<8x896xf32> -> vector<8x896xf32>
    %11 = arith.addf %7, %10 : vector<8x896xf32>
    %12 = vector.extract_strided_slice %4 {offsets = [8, 0], sizes = [8, 8], strides = [1, 1]} : vector<72x8xf32> to vector<8x8xf32>
    %c0_8 = arith.constant 0 : index
    %c104 = arith.constant 104 : index
    %13 = vector.load %arg8[%c0_8, %c104] : memref<8x1152xf32, #tpu.memory_space<vmem>>, vector<8x896xf32>
    %cst_9 = arith.constant dense<0.000000e+00> : vector<8x896xf32>
    %14 = tpu.matmul %12, %13, %cst_9 {dimension_numbers = #tpu.dot_dimension_numbers<[1], [0], [0], [1], [0, 0, 1, 1], [], []>} : vector<8x8xf32>, vector<8x896xf32>, vector<8x896xf32> -> vector<8x896xf32>
    %15 = arith.addf %11, %14 : vector<8x896xf32>
    %16 = vector.extract_strided_slice %4 {offsets = [16, 0], sizes = [8, 8], strides = [1, 1]} : vector<72x8xf32> to vector<8x8xf32>
    %c0_10 = arith.constant 0 : index
    %c105 = arith.constant 105 : index
    %17 = vector.load %arg8[%c0_10, %c105] : memref<8x1152xf32, #tpu.memory_space<vmem>>, vector<8x896xf32>
    %cst_11 = arith.constant dense<0.000000e+00> : vector<8x896xf32>
    %18 = tpu.matmul %16, %17, %cst_11 {dimension_numbers = #tpu.dot_dimension_numbers<[1], [0], [0], [1], [0, 0, 1, 1], [], []>} : vector<8x8xf32>, vector<8x896xf32>, vector<8x896xf32> -> vector<8x896xf32>
    %19 = arith.addf %15, %18 : vector<8x896xf32>
    %20 = vector.extract_strided_slice %4 {offsets = [24, 0], sizes = [8, 8], strides = [1, 1]} : vector<72x8xf32> to vector<8x8xf32>
    %c0_12 = arith.constant 0 : index
    %c127 = arith.constant 127 : index
    %21 = vector.load %arg8[%c0_12, %c127] : memref<8x1152xf32, #tpu.memory_space<vmem>>, vector<8x896xf32>
    %cst_13 = arith.constant dense<0.000000e+00> : vector<8x896xf32>
    %22 = tpu.matmul %20, %21, %cst_13 {dimension_numbers = #tpu.dot_dimension_numbers<[1], [0], [0], [1], [0, 0, 1, 1], [], []>} : vector<8x8xf32>, vector<8x896xf32>, vector<8x896xf32> -> vector<8x896xf32>
    %23 = arith.addf %19, %22 : vector<8x896xf32>
    %24 = vector.extract_strided_slice %4 {offsets = [32, 0], sizes = [8, 8], strides = [1, 1]} : vector<72x8xf32> to vector<8x8xf32>
    %c0_14 = arith.constant 0 : index
    %c128 = arith.constant 128 : index
    %25 = vector.load %arg8[%c0_14, %c128] : memref<8x1152xf32, #tpu.memory_space<vmem>>, vector<8x896xf32>
    %cst_15 = arith.constant dense<0.000000e+00> : vector<8x896xf32>
    %26 = tpu.matmul %24, %25, %cst_15 {dimension_numbers = #tpu.dot_dimension_numbers<[1], [0], [0], [1], [0, 0, 1, 1], [], []>} : vector<8x8xf32>, vector<8x896xf32>, vector<8x896xf32> -> vector<8x896xf32>
    %27 = arith.addf %23, %26 : vector<8x896xf32>
    %28 = vector.extract_strided_slice %4 {offsets = [40, 0], sizes = [8, 8], strides = [1, 1]} : vector<72x8xf32> to vector<8x8xf32>
    %c0_16 = arith.constant 0 : index
    %c129 = arith.constant 129 : index
    %29 = vector.load %arg8[%c0_16, %c129] : memref<8x1152xf32, #tpu.memory_space<vmem>>, vector<8x896xf32>
    %cst_17 = arith.constant dense<0.000000e+00> : vector<8x896xf32>
    %30 = tpu.matmul %28, %29, %cst_17 {dimension_numbers = #tpu.dot_dimension_numbers<[1], [0], [0], [1], [0, 0, 1, 1], [], []>} : vector<8x8xf32>, vector<8x896xf32>, vector<8x896xf32> -> vector<8x896xf32>
    %31 = arith.addf %27, %30 : vector<8x896xf32>
    %32 = vector.extract_strided_slice %4 {offsets = [48, 0], sizes = [8, 8], strides = [1, 1]} : vector<72x8xf32> to vector<8x8xf32>
    %c0_18 = arith.constant 0 : index
    %c151 = arith.constant 151 : index
    %33 = vector.load %arg8[%c0_18, %c151] : memref<8x1152xf32, #tpu.memory_space<vmem>>, vector<8x896xf32>
    %cst_19 = arith.constant dense<0.000000e+00> : vector<8x896xf32>
    %34 = tpu.matmul %32, %33, %cst_19 {dimension_numbers = #tpu.dot_dimension_numbers<[1], [0], [0], [1], [0, 0, 1, 1], [], []>} : vector<8x8xf32>, vector<8x896xf32>, vector<8x896xf32> -> vector<8x896xf32>
    %35 = arith.addf %31, %34 : vector<8x896xf32>
    %36 = vector.extract_strided_slice %4 {offsets = [56, 0], sizes = [8, 8], strides = [1, 1]} : vector<72x8xf32> to vector<8x8xf32>
    %c0_20 = arith.constant 0 : index
    %c152 = arith.constant 152 : index
    %37 = vector.load %arg8[%c0_20, %c152] : memref<8x1152xf32, #tpu.memory_space<vmem>>, vector<8x896xf32>
    %cst_21 = arith.constant dense<0.000000e+00> : vector<8x896xf32>
    %38 = tpu.matmul %36, %37, %cst_21 {dimension_numbers = #tpu.dot_dimension_numbers<[1], [0], [0], [1], [0, 0, 1, 1], [], []>} : vector<8x8xf32>, vector<8x896xf32>, vector<8x896xf32> -> vector<8x896xf32>
    %39 = arith.addf %35, %38 : vector<8x896xf32>
    %40 = vector.extract_strided_slice %4 {offsets = [64, 0], sizes = [8, 8], strides = [1, 1]} : vector<72x8xf32> to vector<8x8xf32>
    %c0_22 = arith.constant 0 : index
    %c153 = arith.constant 153 : index
    %41 = vector.load %arg8[%c0_22, %c153] : memref<8x1152xf32, #tpu.memory_space<vmem>>, vector<8x896xf32>
    %cst_23 = arith.constant dense<0.000000e+00> : vector<8x896xf32>
    %42 = tpu.matmul %40, %41, %cst_23 {dimension_numbers = #tpu.dot_dimension_numbers<[1], [0], [0], [1], [0, 0, 1, 1], [], []>} : vector<8x8xf32>, vector<8x896xf32>, vector<8x896xf32> -> vector<8x896xf32>
    %43 = arith.addf %39, %42 : vector<8x896xf32>
    %44 = vector.broadcast %6 : vector<8x1xf32> to vector<8x896xf32>
    %45 = arith.addf %43, %44 : vector<8x896xf32>
    %c0_24 = arith.constant 0 : index
    %c0_25 = arith.constant 0 : index
    %46 = vector.load %arg6[%c0_24, %c0_25] : memref<1x896xf32, #tpu.memory_space<vmem>>, vector<1x896xf32>
    %47 = vector.shape_cast %46 : vector<1x896xf32> to vector<1x896xf32>
    %48 = vector.broadcast %47 : vector<1x896xf32> to vector<8x896xf32>
    %49 = arith.mulf %45, %48 : vector<8x896xf32>
    %cst_26 = arith.constant dense<0.000000e+00> : vector<8xf32>
    %50 = vector.multi_reduction <add>, %49, %cst_26 [1] : vector<8x896xf32> to vector<8xf32>
    %51 = vector.shape_cast %50 : vector<8xf32> to vector<8x1xf32>
    %cst_27 = arith.constant 0.001953125 : f32
    %52 = vector.broadcast %cst_27 : f32 to vector<8x1xf32>
    %53 = arith.mulf %51, %52 : vector<8x1xf32>
    %54 = vector.broadcast %53 : vector<8x1xf32> to vector<8x896xf32>
    %55 = arith.mulf %54, %48 : vector<8x896xf32>
    %56 = arith.subf %49, %55 : vector<8x896xf32>
    %57 = arith.mulf %56, %56 : vector<8x896xf32>
    %cst_28 = arith.constant dense<0.000000e+00> : vector<8xf32>
    %58 = vector.multi_reduction <add>, %57, %cst_28 [1] : vector<8x896xf32> to vector<8xf32>
    %59 = vector.shape_cast %58 : vector<8xf32> to vector<8x1xf32>
    %cst_29 = arith.constant 0.001953125 : f32
    %60 = vector.broadcast %cst_29 : f32 to vector<8x1xf32>
    %61 = arith.mulf %59, %60 : vector<8x1xf32>
    %c0_30 = arith.constant 0 : index
    %c0_31 = arith.constant 0 : index
    %c0_32 = arith.constant 0 : index
    %62 = vector.load %arg4[%c0_30, %c0_31, %c0_32] : memref<1x8x1xf32, #tpu.memory_space<vmem>>, vector<1x8x1xf32>
    %63 = vector.shape_cast %62 : vector<1x8x1xf32> to vector<8x1xf32>
    %cst_33 = arith.constant 9.99999974E-6 : f32
    %64 = vector.broadcast %cst_33 : f32 to vector<8x1xf32>
    %65 = arith.addf %61, %64 : vector<8x1xf32>
    %66 = math.rsqrt %65 : vector<8x1xf32>
    %67 = arith.mulf %63, %66 : vector<8x1xf32>
    %c0_34 = arith.constant 0 : index
    %c0_35 = arith.constant 0 : index
    %c0_36 = arith.constant 0 : index
    %68 = vector.load %arg5[%c0_34, %c0_35, %c0_36] : memref<1x8x1xf32, #tpu.memory_space<vmem>>, vector<1x8x1xf32>
    %69 = vector.shape_cast %68 : vector<1x8x1xf32> to vector<8x1xf32>
    %70 = arith.mulf %53, %67 : vector<8x1xf32>
    %71 = arith.subf %69, %70 : vector<8x1xf32>
    %72 = vector.broadcast %67 : vector<8x1xf32> to vector<8x896xf32>
    %73 = arith.mulf %45, %72 : vector<8x896xf32>
    %74 = vector.broadcast %71 : vector<8x1xf32> to vector<8x896xf32>
    %75 = arith.addf %73, %74 : vector<8x896xf32>
    %cst_37 = arith.constant 0.000000e+00 : f32
    %76 = vector.broadcast %cst_37 : f32 to vector<8x896xf32>
    %77 = arith.maximumf %75, %76 : vector<8x896xf32>
    %78 = arith.mulf %77, %48 : vector<8x896xf32>
    %c0_38 = arith.constant 0 : index
    %c128_39 = arith.constant 128 : index
    %79 = vector.load %arg8[%c0_38, %c128_39] : memref<8x1152xf32, #tpu.memory_space<vmem>>, vector<8x896xf32>
    tpu.vector_store %arg8[%c0_38, %c128_39], %78 {strides = array<i32>} : memref<8x1152xf32, #tpu.memory_space<vmem>>, vector<8x896xf32>,
    %c0_40 = arith.constant 0 : index
    %c0_41 = arith.constant 0 : index
    %80 = vector.load %arg7[%c0_40, %c0_41] : memref<8x896xf32, #tpu.memory_space<vmem>>, vector<8x896xf32>
    tpu.vector_store %arg7[%c0_40, %c0_41], %78 {strides = array<i32>} : memref<8x896xf32, #tpu.memory_space<vmem>>, vector<8x896xf32>,
    return
  }
  func.func @transform_0(%arg0: i32) -> (i32, i32) {
    %c0_i32 = arith.constant 0 : i32
    %c0_i32_0 = arith.constant 0 : i32
    %c0_i32_1 = arith.constant 0 : i32
    return %c0_i32, %c0_i32_0 : i32, i32
  }
  func.func @transform_1(%arg0: i32) -> (i32, i32, i32) {
    %c0_i32 = arith.constant 0 : i32
    %c0_i32_0 = arith.constant 0 : i32
    %c0_i32_1 = arith.constant 0 : i32
    return %arg0, %c0_i32, %c0_i32_0 : i32, i32, i32
  }
  func.func @transform_2(%arg0: i32) -> (i32, i32, i32) {
    %c0_i32 = arith.constant 0 : i32
    %c0_i32_0 = arith.constant 0 : i32
    %c0_i32_1 = arith.constant 0 : i32
    return %arg0, %c0_i32, %c0_i32_0 : i32, i32, i32
  }
  func.func @transform_3(%arg0: i32) -> (i32, i32, i32) {
    %c0_i32 = arith.constant 0 : i32
    %c0_i32_0 = arith.constant 0 : i32
    %c0_i32_1 = arith.constant 0 : i32
    return %arg0, %c0_i32, %c0_i32_0 : i32, i32, i32
  }
  func.func @transform_4(%arg0: i32) -> (i32, i32, i32) {
    %c0_i32 = arith.constant 0 : i32
    %c0_i32_0 = arith.constant 0 : i32
    %c0_i32_1 = arith.constant 0 : i32
    return %arg0, %c0_i32, %c0_i32_0 : i32, i32, i32
  }
  func.func @transform_5(%arg0: i32) -> (i32, i32) {
    %c0_i32 = arith.constant 0 : i32
    %c0_i32_0 = arith.constant 0 : i32
    %c0_i32_1 = arith.constant 0 : i32
    return %c0_i32, %c0_i32_0 : i32, i32
  }
  func.func @transform_6(%arg0: i32) -> (i32, i32) {
    %c0_i32 = arith.constant 0 : i32
    %c0_i32_0 = arith.constant 0 : i32
    %c0_i32_1 = arith.constant 0 : i32
    return %c0_i32, %c0_i32_0 : i32, i32
  }
}

</mosaic_0001>

<bundles_post_ra>
// kernel: conv_block_forward.1
= control target key start
LH: loop header
LB: loop body
LE: loop exit
PB: predicated region body
PF: predicated region fallthrough
CT: control target
= control target key end

     0   :  { %s2451_s21 = smov 0   ;;  %s2816_s0 = inlined_call_operand.vmem [shape: f32[8,1152], index: 0, kind: input, shape index: {}]   ;;  %s2817_s1 = inlined_call_operand.vmem [shape: f32[2,72,8], index: 1, kind: input, shape index: {}]   ;;  %s2818_s2 = inlined_call_operand.vmem [shape: f32[2,8,1], index: 2, kind: input, shape index: {}]   ;;  %s2819_s3 = inlined_call_operand.vmem [shape: f32[2,8,1], index: 3, kind: input, shape index: {}]   ;;  %s2820_s4 = inlined_call_operand.vmem [shape: f32[2,8,1], index: 4, kind: input, shape index: {}]   ;;  %s2821_s5 = inlined_call_operand.vmem [shape: f32[1,896], index: 5, kind: input, shape index: {}]   ;;  %s2822_s6 = inlined_call_operand.vmem [shape: f32[8,896], index: 6, kind: output, shape index: {}]  }
   0x1 LB: > { %s2143_s22 = sadd.s32 4294967295, %s2405_s21   ;;  %p2146_p0 = scmp.ge.s32.totalorder %s2405_s21, 1  ;;  %s2405_s21 = sphi %s2451_s21, %s16_s21  }
   0x2   : > { %p234_p1 = scmp.lt.s32.totalorder %s2405_s21, 3 }
   0x4   : > { %p235_p2 = pnand %p2146_p0, %p234_p1 }
   0x5   : > { %p271_p3 = scmp.lt.s32.totalorder (!%p235_p2), %s2143_s22, 1  ;;  %p2151_p4 = scmp.ne.s32.totalorder (!%p235_p2), %s2143_s22, 0 }
   0x6   : > { %238 = sbr.rel (%p235_p2) target bundleno = 811 (0x32b), region = 44 }
   0xb   : > { %s272_s23 = scalar_select %p271_p3, %s2143_s22, 1 }
   0xc   : > { %291 = sbr.rel (%p2151_p4) target bundleno = 27 (0x1b), region = 48 }
   0xd   : > { %s2217_s24 = smul.u32 72, %s272_s23  ;;  %s2459_s25 = sshll.u32 %s272_s23, 3 }
   0xe   : > { %s279_s28 = scalar_lea.vmem %s2818_s2, %s2459_s25  ;;  %s283_s7 = scalar_lea.vmem %s2819_s3, %s2459_s25 }
   0xf   : > { %s2472_s10 = scalar_lea.vmem %s2817_s1, %s2217_s24  ;;  %s287_s13 = scalar_lea.vmem %s2820_s4, %s2459_s25 }
  0x11   : > { %v292_v0 = vld [vmem:[%s2816_s0] sm:$0xff]  ;;  %v293_v1 = vld [vmem:[%s2816_s0 + $0x8] sm:$0xff]  ;;  %v294_v2 = vld [vmem:[%s2816_s0 + $0x10] sm:$0xff] }
  0x12   : > { %301 = vst [vmem:[#allocation2 + $0x30] sm:$0xff] %v292_v0  ;;  %v295_v3 = vld [vmem:[%s2816_s0 + $0x18] sm:$0xff]  ;;  %v296_v4 = vld [vmem:[%s2816_s0 + $0x20] sm:$0xff]  ;;  %v297_v5 = vld [vmem:[%s2816_s0 + $0x28] sm:$0xff] }
  0x13   : > { %302 = vst [vmem:[#allocation2] sm:$0xff] %v293_v1  ;;  %v298_v6 = vld [vmem:[%s2816_s0 + $0x30] sm:$0xff]  ;;  %v299_v7 = vld [vmem:[%s2816_s0 + $0x38] sm:$0xff]  ;;  %v300_v8 = vld [vmem:[%s2816_s0 + $0x40] sm:$0xff] }
  0x14   : > { %303 = vst [vmem:[#allocation2 + $0x18] sm:$0xff] %v294_v2 }
  0x15   : > { %304 = vst [vmem:[#allocation2 + $0x10] sm:$0xff] %v295_v3 }
  0x16   : > { %305 = vst [vmem:[#allocation2 + $0x20] sm:$0xff] %v296_v4 }
  0x17   : > { %306 = vst [vmem:[#allocation2 + $0x28] sm:$0xff] %v297_v5 }
  0x18   : > { %307 = vst [vmem:[#allocation2 + $0x40] sm:$0xff] %v298_v6 }
  0x19   : > { %308 = vst [vmem:[#allocation2 + $0x38] sm:$0xff] %v299_v7 }
  0x1a   : > { %309 = vst [vmem:[#allocation2 + $0x8] sm:$0xff] %v300_v8 }
  0x1b PF: > { %v2509_v11 = vld [vmem:[#allocation2 + $0x18] sm:$0xff]  ;;  %v320_v15 = vld [vmem:[#allocation2 + $0x30] sm:$0xff]  ;;  %v2517_v16 = vld [vmem:[#allocation2] sm:$0xff]  ;;  %s2407_s14 = smov 24   ;;  %s2408_s15 = smov 25   ;;  %vm352_vm0 = vcmask 195584  }
  0x1c   : > { %v2513_v13 = vld [vmem:[#allocation2 + $0x10] sm:$0xff]  ;;  %v2240_v17 = vpack.i.bf16 %v2517_v16, %v320_v15  ;;  %s2409_s16 = smov 23   ;;  %v2295_v27 = vpack.i.bf16 %v2509_v11, %v2517_v16  ;;  %s2410_s17 = smov 1   ;;  %vm527_vm1 = vcmask 203776   ;;  %v311_v49 = vld [vmem:[%s2472_s10 + $0x8] sm:$0xff]  ;;  %vm367_vm2 = vcmask 64512  }
  0x1d   : > { %v2505_v9 = vld [vmem:[#allocation2 + $0x20] sm:$0xff]  ;;  %v2235_v14 = vpack.i.bf16 %v2513_v13, %v2509_v11  ;;  %v2300_v26 = vpack.i.bf16 %v320_v15, %v2513_v13  ;;  %s2411_s18 = smov 127   ;;  %s2412_s19 = smov 105   ;;  %vm701_vm3 = vcmask 187392   ;;  %vm882_vm4 = vcmask 7168  }
  0x1e   : > { %v2520_v18 = vld [vmem:[#allocation2 + $0x28] sm:$0xff]  ;;  %2256 = vrot.lane.b32.xlu2 %v2240_v17, %s2408_s15  ;;  %v2260_v21 = vpack.i.bf16 %v2505_v9, %v2513_v13  ;;  %v2280_v25 = vpack.i.bf16 %v2505_v9, %v2509_v11  ;;  %v2360_v36 = vpack.i.bf16 %v2517_v16, %v2505_v9  ;;  %s2413_s20 = smov 104   ;;  %s2414_s23 = smov 103   ;;  %v2570_v4 = vld [vmem:[%s2472_s10] sm:$0xff]  ;;  %vm1229_vm5 = vcmask 1039360  }
  0x1f   : > { %v2507_v10 = vld [vmem:[#allocation2 + $0x40] sm:$0xff]  ;;  %2236 = vrot.lane.b32.xlu0 %v2235_v14, %s2407_s14  ;;  %v2265_v22 = vpack.i.bf16 %v2520_v18, %v2509_v11  ;;  %v2285_v24 = vpack.i.bf16 %v2513_v13, %v2520_v18  ;;  %v2320_v30 = vpack.i.bf16 %v2520_v18, %v2505_v9  ;;  %v2340_v35 = vpack.i.bf16 %v2520_v18, %v2513_v13 }
  0x20   : > { %v2245_v12 = vpack.i.bf16 %v2507_v10, %v2505_v9  ;;  %v2522_v19 = vld [vmem:[#allocation2 + $0x38] sm:$0xff]  ;;  %v2305_v28 = vpack.i.bf16 %v2507_v10, %v2520_v18  ;;  %v2325_v32 = vpack.i.bf16 %v2507_v10, %v2513_v13  ;;  %v2345_v34 = vpack.i.bf16 %v2505_v9, %v2507_v10 }
  0x21   : > { %v2250_v20 = vpack.i.bf16 %v2520_v18, %v2522_v19  ;;  %v2275_v23 = vpack.i.bf16 %v2522_v19, %v2507_v10  ;;  %v2310_v29 = vpack.i.bf16 %v2522_v19, %v2505_v9  ;;  %v1204_v31 = vld [vmem:[#allocation2 + $0x8] sm:$0xff]  ;;  %v2385_v38 = vpack.i.bf16 %v2522_v19, %v2520_v18 }
  0x22   : > { %2246 = vrot.lane.b32.xlu1 %v2245_v12, %s2407_s14  ;;  %v2335_v33 = vpack.i.bf16 %v1204_v31, %v2522_v19  ;;  %v2370_v37 = vpack.i.bf16 %v1204_v31, %v2520_v18  ;;  %v2390_v39 = vpack.i.bf16 %v2507_v10, %v1204_v31  ;;  %vm1410_vm6 = vcmask 859136  }
  0x23   : > { %vm1591_vm7 = vcmask 850944   ;;  %vm1772_vm8 = vcmask 842752  }
  0x26   : > { %2261 = vrot.lane.b32.xlu2 %v2260_v21, %s2408_s15 }
  0x27   : > { %2241 = vrot.lane.b32.xlu0 %v2240_v17, %s2407_s14 }
  0x2a   : > { %2251 = vrot.lane.b32.xlu1 %v2250_v20, %s2407_s14 }
  0x2e   : > { %2276 = vrot.lane.b32.xlu2 %v2275_v23, %s2408_s15 }
  0x2f   : > { %2266 = vrot.lane.b32.xlu0 %v2265_v22, %s2408_s15 }
  0x32   : > { %2271 = vrot.lane.b32.xlu1 %v2240_v17, %s2409_s16 }
  0x36   : > { %2291 = vrot.lane.b32.xlu2 %v2275_v23, %s2409_s16 }
  0x37   : > { %2281 = vrot.lane.b32.xlu0 %v2280_v25, %s2409_s16 }
  0x3a   : > { %2286 = vrot.lane.b32.xlu1 %v2285_v24, %s2409_s16 }
  0x3e   : > { %2306 = vrot.lane.b32.xlu2 %v2305_v28, %s2410_s17 }
  0x3f   : > { %2296 = vrot.lane.b32.xlu0 %v2295_v27, %s2410_s17 }
  0x42   : > { %2301 = vrot.lane.b32.xlu1 %v2300_v26, %s2410_s17 }
  0x46   : > { %2321 = vrot.lane.b32.xlu2 %v2320_v30, %s2411_s18 }
  0x47   : > { %2311 = vrot.lane.b32.xlu0 %v2310_v29, %s2410_s17 }
  0x4a   : > { %2316 = vrot.lane.b32.xlu1 %v2295_v27, %s2411_s18 }
  0x4e   : > { %2336 = vrot.lane.b32.xlu2 %v2335_v33, %s2411_s18 }
  0x4f   : > { %2326 = vrot.lane.b32.xlu0 %v2325_v32, %s2411_s18 }
  0x52   : > { %2331 = vrot.lane.b32.xlu1 %v2295_v27, %s2412_s19 }
  0x56   : > { %2351 = vrot.lane.b32.xlu2 %v2335_v33, %s2412_s19 }
  0x57   : > { %2341 = vrot.lane.b32.xlu0 %v2340_v35, %s2412_s19 }
  0x5a   : > { %2346 = vrot.lane.b32.xlu1 %v2345_v34, %s2412_s19 }
  0x5e   : > { %2366 = vrot.lane.b32.xlu2 %v2275_v23, %s2413_s20 }
  0x5f   : > { %2356 = vrot.lane.b32.xlu0 %v2235_v14, %s2413_s20 }
  0x62   : > { %2361 = vrot.lane.b32.xlu1 %v2360_v36, %s2413_s20 }
  0x66   : > { %2381 = vrot.lane.b32.xlu2 %v2295_v27, %s2414_s23 }
  0x67   : > { %2371 = vrot.lane.b32.xlu0 %v2370_v37, %s2413_s20 }
  0x6a   : > { %2376 = vrot.lane.b32.xlu1 %v2260_v21, %s2414_s23 }
  0x6f   : > { %2386 = vrot.lane.b32.xlu0 %v2385_v38, %s2414_s23 }
  0x72   : > { %2391 = vrot.lane.b32.xlu1 %v2390_v39, %s2414_s23  ;;  %v312_v39 = vld [vmem:[%s2472_s10 + $0x10] sm:$0xff] }
  0x78   : > { %v2257_v40 = vpop.permute.xlu2 %2256 }
  0x79   : > { %v2259_v42 = vunpack.i.h.bf16 %v2257_v40  ;;  %v2258_v43 = vunpack.i.l.bf16 %v2257_v40 }
  0x7b   : > { %v528_v52 = vsel %vm527_vm1, %v2258_v43, %v2259_v42 }
  0x80   : > { %v2262_v44 = vpop.permute.xlu2 %2261 }
  0x81   : > { %v2264_v60 = vunpack.i.h.bf16 %v2262_v44  ;;  %v2263_v61 = vunpack.i.l.bf16 %v2262_v44 }
  0x83   : > { %v531_v5 = vsel %vm527_vm1, %v2263_v61, %v2264_v60 }
  0x88   : > { %v2277_v62 = vpop.permute.xlu2 %2276 }
  0x89   : > { %v2278_v7 = vunpack.i.l.bf16 %v2277_v62  ;;  %v2279_v20 = vunpack.i.h.bf16 %v2277_v62 }
  0x8b   : > { %v534_v27 = vsel %vm527_vm1, %v2278_v7, %v2279_v20 }
  0x90   : > { %v2292_v26 = vpop.permute.xlu2 %2291 }
  0x91   : > { %v2237_v46 = vpop.permute.xlu0 %2236  ;;  %v2293_v28 = vunpack.i.l.bf16 %v2292_v26 }
  0x92   : > { %v2239_v47 = vunpack.i.h.bf16 %v2237_v46  ;;  %v2238_v48 = vunpack.i.l.bf16 %v2237_v46 }
  0x94   : > { %v2247_v41 = vpop.permute.xlu1 %2246  ;;  %v355_v50 = vsel %vm352_vm0, %v2238_v48, %v2239_v47 }
  0x95   : > { %v2248_v45 = vunpack.i.l.bf16 %v2247_v41  ;;  %426 = vmatpush.msra.mxu2 %v355_v50  ;;  %v2249_v54 = vunpack.i.h.bf16 %v2247_v41 }
  0x96   : > { %2154 = vmatmul.msk.f32.vlgmr.msra.gmra.mxu2 %vm367_vm2, %v311_v49 }
  0x97   : > { %v356_v51 = vsel %vm352_vm0, %v2239_v47, %v2248_v45 }
  0x98   : > { %446 = vmatpush.msra.mxu3 %v356_v51  ;;  %v2307_v41 = vpop.permute.xlu2 %2306 }
  0x99   : > { %2155 = vmatmul.msk.f32.vlgmr.msra.gmra.mxu3 %vm367_vm2, %v311_v49  ;;  %v2242_v57 = vpop.permute.xlu0 %2241  ;;  %v2309_v46 = vunpack.i.h.bf16 %v2307_v41  ;;  %v2308_v50 = vunpack.i.l.bf16 %v2307_v41  ;;  %v316_v41 = vld [vmem:[%s2472_s10 + $0x30] sm:$0xff] }
  0x9a   : > { %560 = vmatpush.msrb.mxu3 %v528_v52  ;;  %v2244_v58 = vunpack.i.h.bf16 %v2242_v57  ;;  %v2243_v59 = vunpack.i.l.bf16 %v2242_v57 }
  0x9c   : > { %v2252_v53 = vpop.permute.xlu1 %2251  ;;  %v353_v0 = vsel %vm352_vm0, %v2243_v59, %v2244_v58  ;;  %v354_v1 = vsel %vm352_vm0, %v2244_v58, %v2238_v48 }
  0x9d   : > { %v2254_v55 = vunpack.i.h.bf16 %v2252_v53  ;;  %v2253_v56 = vunpack.i.l.bf16 %v2252_v53  ;;  %386 = vmatpush.msra.mxu0 %v353_v0  ;;  %406 = vmatpush.msra.mxu1 %v354_v1 }
  0x9e   : > { %2152 = vmatmul.msk.f32.vlgmr.msra.gmra.mxu0 %vm367_vm2, %v311_v49  ;;  %2153 = vmatmul.msk.f32.vlgmr.msra.gmra.mxu1 %vm367_vm2, %v311_v49 }
  0x9f   : > { %v359_v63 = vsel %vm352_vm0, %v2249_v54, %v2253_v56  ;;  %v357_v2 = vsel %vm352_vm0, %v2248_v45, %v2254_v55  ;;  %v358_v3 = vsel %vm352_vm0, %v2254_v55, %v2249_v54  ;;  %v888_v55 = vsel %vm882_vm4, %v2308_v50, %v2309_v46 }
  0xa0   : > { %506 = vmatpush.msrb.mxu2 %v359_v63  ;;  %466 = vmatpush.msrb.mxu0 %v357_v2  ;;  %v2322_v2 = vpop.permute.xlu2 %2321 }
  0xa1   : > { %486 = vmatpush.msrb.mxu1 %v358_v3  ;;  %2158 = vmatmul.msk.f32.vlgmr.msrb.gmra.mxu2 %vm367_vm2, %v311_v49  ;;  %v2267_v8 = vpop.permute.xlu0 %2266 }
  0xa2   : > { %2159 = vmatmul.msk.f32.vlgmr.msrb.gmra.mxu3 %vm367_vm2, %v2570_v4  ;;  %620 = vmatpush.msra.mxu2 %v531_v5  ;;  %v2269_v15 = vunpack.i.h.bf16 %v2267_v8  ;;  %v2268_v17 = vunpack.i.l.bf16 %v2267_v8 }
  0xa4   : > { %v2272_v6 = vpop.permute.xlu1 %2271  ;;  %v529_v22 = vsel %vm527_vm1, %v2259_v42, %v2268_v17  ;;  %v530_v23 = vsel %vm527_vm1, %v2268_v17, %v2263_v61  ;;  %v532_v24 = vsel %vm527_vm1, %v2264_v60, %v2269_v15  ;;  %v533_v25 = vsel %vm527_vm1, %v2269_v15, %v2278_v7  ;;  %v313_v61 = vld [vmem:[%s2472_s10 + $0x18] sm:$0xff]  ;;  %v314_v7 = vld [vmem:[%s2472_s10 + $0x20] sm:$0xff] }
  0xa5   : > { %v2274_v12 = vunpack.i.h.bf16 %v2272_v6  ;;  %v2273_v14 = vunpack.i.l.bf16 %v2272_v6  ;;  %580 = vmatpush.msra.mxu0 %v529_v22  ;;  %600 = vmatpush.msra.mxu1 %v530_v23  ;;  %v2294_v42 = vunpack.i.h.bf16 %v2292_v26 }
  0xa6   : > { %640 = vmatpush.msra.mxu3 %v532_v24  ;;  %2156 = vmatmul.msk.f32.vlgmr.msrb.gmra.mxu0 %vm367_vm2, %v311_v49 }
  0xa7   : > { %v702_v21 = vsel %vm701_vm3, %v2273_v14, %v2274_v12  ;;  %2157 = vmatmul.msk.f32.vlgmr.msrb.gmra.mxu1 %vm367_vm2, %v311_v49  ;;  %660 = vmatpush.msrb.mxu0 %v533_v25  ;;  %v708_v51 = vsel %vm701_vm3, %v2293_v28, %v2294_v42 }
  0xa8   : > { %734 = vmatpush.msrb.mxu2 %v702_v21  ;;  %680 = vmatpush.msrb.mxu1 %v534_v27  ;;  %v2337_v8 = vpop.permute.xlu2 %2336  ;;  %v2642_v21 = vld [vmem:[%s2472_s10 + $0x28] sm:$0xff] }
  0xa9   : > { %2162 = vmatmul.msk.f32.vlgmr.msra.gmra.mxu2 %vm367_vm2, %v2570_v4  ;;  %v2282_v30 = vpop.permute.xlu0 %2281  ;;  %v2338_v24 = vunpack.i.l.bf16 %v2337_v8  ;;  %v2339_v26 = vunpack.i.h.bf16 %v2337_v8 }
  0xaa   : > { %2163 = vmatmul.msk.f32.vlgmr.msra.gmra.mxu3 %vm367_vm2, %v2570_v4  ;;  %v2284_v33 = vunpack.i.h.bf16 %v2282_v30  ;;  %v2283_v34 = vunpack.i.l.bf16 %v2282_v30 }
  0xac   : > { %v2287_v29 = vpop.permute.xlu1 %2286  ;;  %v703_v36 = vsel %vm701_vm3, %v2274_v12, %v2283_v34 }
  0xad   : > { %v2289_v31 = vunpack.i.h.bf16 %v2287_v29  ;;  %v2288_v32 = vunpack.i.l.bf16 %v2287_v29  ;;  %754 = vmatpush.msrb.mxu3 %v703_v36 }
  0xae   : > { %2160 = vmatmul.msk.f32.vlgmr.msra.gmra.mxu0 %vm367_vm2, %v2570_v4 }
  0xaf   : > { %v707_v35 = vsel %vm701_vm3, %v2288_v32, %v2293_v28  ;;  %v704_v37 = vsel %vm701_vm3, %v2283_v34, %v2289_v31  ;;  %v706_v38 = vsel %vm701_vm3, %v2284_v33, %v2288_v32  ;;  %v705_v40 = vsel %vm701_vm3, %v2289_v31, %v2284_v33  ;;  %2161 = vmatmul.msk.f32.vlgmr.msra.gmra.mxu1 %vm367_vm2, %v2570_v4 }
  0xb0   : > { %814 = vmatpush.msra.mxu2 %v706_v38  ;;  %834 = vmatpush.msra.mxu3 %v707_v35  ;;  %v2352_v25 = vpop.permute.xlu2 %2351  ;;  %v1236_v32 = vsel %vm1229_vm5, %v2338_v24, %v2339_v26 }
  0xb1   : > { %774 = vmatpush.msra.mxu0 %v704_v37  ;;  %2166 = vmatmul.msk.f32.vlgmr.msrb.gmra.mxu2 %vm367_vm2, %v312_v39  ;;  %v2297_v44 = vpop.permute.xlu0 %2296  ;;  %v2353_v29 = vunpack.i.l.bf16 %v2352_v25 }
  0xb2   : > { %2167 = vmatmul.msk.f32.vlgmr.msrb.gmra.mxu3 %vm367_vm2, %v312_v39  ;;  %794 = vmatpush.msra.mxu1 %v705_v40  ;;  %v2299_v47 = vunpack.i.h.bf16 %v2297_v44  ;;  %v2298_v48 = vunpack.i.l.bf16 %v2297_v44 }
  0xb4   : > { %v2302_v43 = vpop.permute.xlu1 %2301  ;;  %v884_v52 = vsel %vm882_vm4, %v2298_v48, %v2299_v47 }
  0xb5   : > { %v2303_v45 = vunpack.i.l.bf16 %v2302_v43  ;;  %v2304_v49 = vunpack.i.h.bf16 %v2302_v43  ;;  %935 = vmatpush.msrb.mxu2 %v884_v52 }
  0xb6   : > { %2164 = vmatmul.msk.f32.vlgmr.msrb.gmra.mxu0 %vm367_vm2, %v2570_v4 }
  0xb7   : > { %v885_v53 = vsel %vm882_vm4, %v2299_v47, %v2303_v45  ;;  %v883_v54 = vsel %vm882_vm4, %v2304_v49, %v2298_v48  ;;  %2165 = vmatmul.msk.f32.vlgmr.msrb.gmra.mxu1 %vm367_vm2, %v2570_v4  ;;  %854 = vmatpush.msrb.mxu0 %v708_v51  ;;  %v2354_v47 = vunpack.i.h.bf16 %v2352_v25 }
  0xb8   : > { %955 = vmatpush.msrb.mxu3 %v885_v53  ;;  %915 = vmatpush.msrb.mxu1 %v883_v54 }
  0xb9   : > { %2170 = vmatmul.msk.f32.vlgmr.msra.gmra.mxu2 %vm367_vm2, %v312_v39  ;;  %v2312_v56 = vpop.permute.xlu0 %2311  ;;  %v1417_v52 = vsel %vm1410_vm6, %v2353_v29, %v2354_v47 }
  0xba   : > { %2171 = vmatmul.msk.f32.vlgmr.msra.gmra.mxu3 %vm367_vm2, %v312_v39  ;;  %1015 = vmatpush.msra.mxu2 %v888_v55  ;;  %v2314_v57 = vunpack.i.h.bf16 %v2312_v56  ;;  %v2313_v58 = vunpack.i.l.bf16 %v2312_v56 }
  0xbc   : > { %v886_v59 = vsel %vm882_vm4, %v2303_v45, %v2313_v58  ;;  %v889_v60 = vsel %vm882_vm4, %v2309_v46, %v2314_v57  ;;  %v887_v62 = vsel %vm882_vm4, %v2313_v58, %v2308_v50  ;;  %v2317_v63 = vpop.permute.xlu1 %2316  ;;  %v2367_v46 = vpop.permute.xlu2 %2366 }
  0xbd   : > { %1035 = vmatpush.msra.mxu3 %v889_v60  ;;  %v2319_v0 = vunpack.i.h.bf16 %v2317_v63  ;;  %v2318_v1 = vunpack.i.l.bf16 %v2317_v63  ;;  %v2369_v49 = vunpack.i.h.bf16 %v2367_v46  ;;  %v2368_v50 = vunpack.i.l.bf16 %v2367_v46  ;;  %v317_v63 = vld [vmem:[%s2472_s10 + $0x38] sm:$0xff] }
  0xbe   : > { %2168 = vmatmul.msk.f32.vlgmr.msra.gmra.mxu0 %vm367_vm2, %v312_v39 }
  0xbf   : > { %2169 = vmatmul.msk.f32.vlgmr.msra.gmra.mxu1 %vm367_vm2, %v312_v39  ;;  %975 = vmatpush.msra.mxu0 %v886_v59  ;;  %v1230_v4 = vsel %vm1229_vm5, %v2318_v1, %v2319_v0  ;;  %v1597_v55 = vsel %vm1591_vm7, %v2368_v50, %v2369_v49 }
  0xc0   : > { %995 = vmatpush.msra.mxu1 %v887_v62 }
  0xc1   : > { %2174 = vmatmul.msk.f32.vlgmr.msrb.gmra.mxu2 %vm367_vm2, %v313_v61  ;;  %v2327_v3 = vpop.permute.xlu0 %2326 }
  0xc2   : > { %2175 = vmatmul.msk.f32.vlgmr.msrb.gmra.mxu3 %vm367_vm2, %v313_v61  ;;  %1105 = vmatpush.msrb.mxu2 %v2513_v13  ;;  %v2323_v13 = vunpack.i.l.bf16 %v2322_v2  ;;  %v2329_v5 = vunpack.i.h.bf16 %v2327_v3 }
  0xc3   : > { %1125 = vmatpush.msrb.mxu3 %v2505_v9  ;;  %v2324_v9 = vunpack.i.h.bf16 %v2322_v2 }
  0xc4   : > { %v2332_v6 = vpop.permute.xlu1 %2331  ;;  %v1235_v30 = vsel %vm1229_vm5, %v2329_v5, %v2338_v24 }
  0xc5   : > { %v2334_v14 = vunpack.i.h.bf16 %v2332_v6  ;;  %v2333_v15 = vunpack.i.l.bf16 %v2332_v6 }
  0xc6   : > { %2172 = vmatmul.msk.f32.vlgmr.msrb.gmra.mxu0 %vm367_vm2, %v312_v39 }
  0xc7   : > { %2173 = vmatmul.msk.f32.vlgmr.msrb.gmra.mxu1 %vm367_vm2, %v313_v61  ;;  %1065 = vmatpush.msrb.mxu0 %v2517_v16  ;;  %v1233_v16 = vsel %vm1229_vm5, %v2323_v13, %v2324_v9  ;;  %v1411_v23 = vsel %vm1410_vm6, %v2333_v15, %v2334_v14  ;;  %v319_v15 = vld [vmem:[%s279_s28] sm:$0xff] }
  0xc8   : > { %1085 = vmatpush.msrb.mxu1 %v2509_v11  ;;  %v1234_v11 = vsel %vm1229_vm5, %v2324_v9, %v2329_v5 }
  0xc9   : > { %2178 = vmatmul.msk.f32.vlgmr.msra.gmra.mxu2 %vm367_vm2, %v313_v61  ;;  %v2342_v12 = vpop.permute.xlu0 %2341 }
  0xca   : > { %2179 = vmatmul.msk.f32.vlgmr.msra.gmra.mxu3 %vm367_vm2, %v313_v61  ;;  %1185 = vmatpush.msra.mxu2 %v2522_v19  ;;  %v2328_v19 = vunpack.i.l.bf16 %v2327_v3  ;;  %v2343_v17 = vunpack.i.l.bf16 %v2342_v12  ;;  %v2344_v27 = vunpack.i.h.bf16 %v2342_v12  ;;  %v318_v12 = vld [vmem:[%s2472_s10 + $0x40] sm:$0xff] }
  0xcb   : > { %1262 = vmatpush.msra.mxu3 %v1230_v4 }
  0xcc   : > { %v1231_v20 = vsel %vm1229_vm5, %v2319_v0, %v2328_v19  ;;  %v2347_v22 = vpop.permute.xlu1 %2346  ;;  %v2382_v0 = vpop.permute.xlu2 %2381 }
  0xcd   : > { %v2348_v28 = vunpack.i.l.bf16 %v2347_v22  ;;  %v2349_v35 = vunpack.i.h.bf16 %v2347_v22  ;;  %v2384_v9 = vunpack.i.h.bf16 %v2382_v0 }
  0xce   : > { %2176 = vmatmul.msk.f32.vlgmr.msra.gmra.mxu0 %vm367_vm2, %v313_v61 }
  0xcf   : > { %2177 = vmatmul.msk.f32.vlgmr.msra.gmra.mxu1 %vm367_vm2, %v313_v61  ;;  %1145 = vmatpush.msra.mxu0 %v2520_v18  ;;  %v1232_v18 = vsel %vm1229_vm5, %v2328_v19, %v2323_v13  ;;  %v1415_v33 = vsel %vm1410_vm6, %v2344_v27, %v2348_v28  ;;  %v1416_v34 = vsel %vm1410_vm6, %v2348_v28, %v2353_v29  ;;  %v2383_v13 = vunpack.i.l.bf16 %v2382_v0 }
  0xd0   : > { %1165 = vmatpush.msra.mxu1 %v2507_v10  ;;  %v1412_v10 = vsel %vm1410_vm6, %v2334_v14, %v2343_v17  ;;  %v1413_v40 = vsel %vm1410_vm6, %v2343_v17, %v2349_v35  ;;  %v1414_v42 = vsel %vm1410_vm6, %v2349_v35, %v2344_v27  ;;  %v2415_v17 = vmov 0  }
  0xd1   : > { %2182 = vmatmul.msk.f32.vlgmr.msrb.gmra.mxu2 %vm367_vm2, %v314_v7  ;;  %v2357_v31 = vpop.permute.xlu0 %2356  ;;  %2395 = vset.pattern.permute.xlu2 %v2415_v17 }
  0xd2   : > { %2183 = vmatmul.msk.f32.vlgmr.msrb.gmra.mxu3 %vm367_vm2, %v314_v7  ;;  %1322 = vmatpush.msrb.mxu2 %v1233_v16  ;;  %v2359_v37 = vunpack.i.h.bf16 %v2357_v31  ;;  %v2358_v38 = vunpack.i.l.bf16 %v2357_v31 }
  0xd3   : > { %1342 = vmatpush.msrb.mxu3 %v1234_v11  ;;  %1939 = vperm.xlu2 %2395, %v319_v15  }
  0xd4   : > { %v2362_v36 = vpop.permute.xlu1 %2361  ;;  %v1593_v44 = vsel %vm1591_vm7, %v2358_v38, %v2359_v37  ;;  %2396 = vset.pattern.permute.xlu0 %v2415_v17 }
  0xd5   : > { %v2363_v39 = vunpack.i.l.bf16 %v2362_v36  ;;  %v2364_v48 = vunpack.i.h.bf16 %v2362_v36 }
  0xd6   : > { %2180 = vmatmul.msk.f32.vlgmr.msrb.gmra.mxu0 %vm367_vm2, %v314_v7 }
  0xd7   : > { %2181 = vmatmul.msk.f32.vlgmr.msrb.gmra.mxu1 %vm367_vm2, %v314_v7  ;;  %1282 = vmatpush.msrb.mxu0 %v1231_v20  ;;  %v1594_v45 = vsel %vm1591_vm7, %v2359_v37, %v2363_v39  ;;  %v1592_v54 = vsel %vm1591_vm7, %v2364_v48, %v2358_v38 }
  0xd8   : > { %1302 = vmatpush.msrb.mxu1 %v1232_v18 }
  0xd9   : > { %2186 = vmatmul.msk.f32.vlgmr.msra.gmra.mxu2 %vm367_vm2, %v314_v7  ;;  %v2372_v43 = vpop.permute.xlu0 %2371 }
  0xda   : > { %2187 = vmatmul.msk.f32.vlgmr.msra.gmra.mxu3 %vm367_vm2, %v2642_v21  ;;  %1443 = vmatpush.msra.mxu2 %v1411_v23  ;;  %v2374_v51 = vunpack.i.h.bf16 %v2372_v43  ;;  %v2373_v57 = vunpack.i.l.bf16 %v2372_v43 }
  0xdb   : > { %1463 = vmatpush.msra.mxu3 %v1412_v10 }
  0xdc   : > { %v2377_v53 = vpop.permute.xlu1 %2376  ;;  %v1598_v56 = vsel %vm1591_vm7, %v2369_v49, %v2374_v51  ;;  %v1595_v62 = vsel %vm1591_vm7, %v2363_v39, %v2373_v57  ;;  %v1596_v1 = vsel %vm1591_vm7, %v2373_v57, %v2368_v50 }
  0xdd   : > { %v2379_v59 = vunpack.i.h.bf16 %v2377_v53  ;;  %v2378_v60 = vunpack.i.l.bf16 %v2377_v53 }
  0xde   : > { %2184 = vmatmul.msk.f32.vlgmr.msra.gmra.mxu0 %vm367_vm2, %v314_v7 }
  0xdf   : > { %2185 = vmatmul.msk.f32.vlgmr.msra.gmra.mxu1 %vm367_vm2, %v314_v7  ;;  %1362 = vmatpush.msra.mxu0 %v1235_v30  ;;  %v1775_v2 = vsel %vm1772_vm8, %v2378_v60, %v2379_v59  ;;  %v1773_v7 = vsel %vm1772_vm8, %v2383_v13, %v2384_v9  ;;  %v1774_v8 = vsel %vm1772_vm8, %v2384_v9, %v2378_v60 }
  0xe0   : > { %1382 = vmatpush.msra.mxu1 %v1236_v32 }
  0xe1   : > { %2190 = vmatmul.msk.f32.vlgmr.msrb.gmra.mxu2 %vm367_vm2, %v2642_v21  ;;  %v2387_v58 = vpop.permute.xlu0 %2386 }
  0xe2   : > { %2191 = vmatmul.msk.f32.vlgmr.msrb.gmra.mxu3 %vm367_vm2, %v2642_v21  ;;  %1523 = vmatpush.msrb.mxu2 %v1415_v33  ;;  %v2388_v61 = vunpack.i.l.bf16 %v2387_v58  ;;  %v2389_v5 = vunpack.i.h.bf16 %v2387_v58 }
  0xe3   : > { %1543 = vmatpush.msrb.mxu3 %v1416_v34 }
  0xe4   : > { %v2392_v3 = vpop.permute.xlu1 %2391  ;;  %v1776_v4 = vsel %vm1772_vm8, %v2379_v59, %v2388_v61 }
  0xe5   : > { %v2393_v6 = vunpack.i.l.bf16 %v2392_v3  ;;  %v2394_v11 = vunpack.i.h.bf16 %v2392_v3 }
  0xe6   : > { %2188 = vmatmul.msk.f32.vlgmr.msrb.gmra.mxu0 %vm367_vm2, %v2642_v21 }
  0xe7   : > { %2189 = vmatmul.msk.f32.vlgmr.msrb.gmra.mxu1 %vm367_vm2, %v2642_v21  ;;  %1483 = vmatpush.msrb.mxu0 %v1413_v40  ;;  %v1779_v16 = vsel %vm1772_vm8, %v2389_v5, %v2393_v6  ;;  %v1777_v19 = vsel %vm1772_vm8, %v2388_v61, %v2394_v11  ;;  %v1778_v14 = vsel %vm1772_vm8, %v2394_v11, %v2389_v5 }
  0xe8   : > { %1503 = vmatpush.msrb.mxu1 %v1414_v42 }
  0xe9   : > { %2194 = vmatmul.msk.f32.vlgmr.msra.gmra.mxu2 %vm367_vm2, %v316_v41 }
  0xea   : > { %2195 = vmatmul.msk.f32.vlgmr.msra.gmra.mxu3 %vm367_vm2, %v316_v41  ;;  %1644 = vmatpush.msra.mxu2 %v1593_v44 }
  0xeb   : > { %1664 = vmatpush.msra.mxu3 %v1594_v45 }
  0xee   : > { %2192 = vmatmul.msk.f32.vlgmr.msra.gmra.mxu0 %vm367_vm2, %v2642_v21 }
  0xef   : > { %2193 = vmatmul.msk.f32.vlgmr.msra.gmra.mxu1 %vm367_vm2, %v2642_v21  ;;  %1563 = vmatpush.msra.mxu0 %v1417_v52 }
  0xf0   : > { %1624 = vmatpush.msra.mxu1 %v1592_v54 }
  0xf1   : > { %2198 = vmatmul.msk.f32.vlgmr.msrb.gmra.mxu2 %vm367_vm2, %v316_v41 }
  0xf2   : > { %2199 = vmatmul.msk.f32.vlgmr.msrb.gmra.mxu3 %vm367_vm2, %v316_v41  ;;  %1724 = vmatpush.msrb.mxu2 %v1597_v55 }
  0xf3   : > { %1744 = vmatpush.msrb.mxu3 %v1598_v56 }
  0xf6   : > { %2196 = vmatmul.msk.f32.vlgmr.msrb.gmra.mxu0 %vm367_vm2, %v316_v41 }
  0xf7   : > { %2197 = vmatmul.msk.f32.vlgmr.msrb.gmra.mxu1 %vm367_vm2, %v316_v41  ;;  %1684 = vmatpush.msrb.mxu0 %v1595_v62 }
  0xf8   : > { %1704 = vmatpush.msrb.mxu1 %v1596_v1 }
  0xf9   : > { %2202 = vmatmul.msk.f32.vlgmr.msra.gmra.mxu2 %vm367_vm2, %v317_v63 }
  0xfa   : > { %2203 = vmatmul.msk.f32.vlgmr.msra.gmra.mxu3 %vm367_vm2, %v317_v63  ;;  %1845 = vmatpush.msra.mxu2 %v1775_v2 }
  0xfb   : > { %1865 = vmatpush.msra.mxu3 %v1776_v4 }
  0xfe   : > { %2200 = vmatmul.msk.f32.vlgmr.msra.gmra.mxu0 %vm367_vm2, %v316_v41 }
  0xff   : > { %2201 = vmatmul.msk.f32.vlgmr.msra.gmra.mxu1 %vm367_vm2, %v317_v63  ;;  %1805 = vmatpush.msra.mxu0 %v1773_v7 }
 0x100   : > { %1825 = vmatpush.msra.mxu1 %v1774_v8 }
 0x101   : > { %2206 = vmatmul.msk.f32.vlgmr.msrb.gmra.mxu2 %vm367_vm2, %v317_v63 }
 0x102   : > { %2207 = vmatmul.msk.f32.vlgmr.msrb.gmra.mxu3 %vm367_vm2, %v317_v63  ;;  %1925 = vmatpush.msrb.mxu2 %v1779_v16 }
 0x106   : > { %2204 = vmatmul.msk.f32.vlgmr.msrb.gmra.mxu0 %vm367_vm2, %v317_v63 }
 0x107   : > { %2205 = vmatmul.msk.f32.vlgmr.msrb.gmra.mxu1 %vm367_vm2, %v317_v63  ;;  %1885 = vmatpush.msrb.mxu0 %v1777_v19 }
 0x108   : > { %1905 = vmatpush.msrb.mxu1 %v1778_v14 }
 0x109   : > { %2210 = vmatmul.msk.f32.vlgmr.msra.gmra.mxu2 %vm367_vm2, %v318_v12 }
 0x10a   : > { %2211 = vmatmul.msk.f32.vlgmr.msra.gmra.mxu3 %vm367_vm2, %v318_v12 }
 0x10e   : > { %2208 = vmatmul.msk.f32.vlgmr.msra.gmra.mxu0 %vm367_vm2, %v318_v12 }
 0x10f   : > { %2209 = vmatmul.msk.f32.vlgmr.msra.gmra.mxu1 %vm367_vm2, %v318_v12 }
 0x111   : > { %2214 = vmatmul.msk.f32.vlgmr.msrb.gmra.mxu2 %vm367_vm2, %v318_v12 }
 0x116   : > { %2212 = vmatmul.msk.f32.vlgmr.msrb.gmra.mxu0 %vm367_vm2, %v318_v12 }
 0x117   : > { %2213 = vmatmul.msk.f32.vlgmr.msrb.gmra.mxu1 %vm367_vm2, %v318_v12 }
 0x119   : > { %v428_v20 = vpop.f32.mrf.mxu2 }
 0x11b   : > { %v388_v18 = vpop.f32.mrf.mxu0  ;;  %v408_v22 = vpop.f32.mrf.mxu1 }
 0x11c   : > { %v448_v21 = vpop.f32.mrf.mxu3 }
 0x123   : > { %v468_v25 = vpop.f32.mrf.mxu0 }
 0x124   : > { %v508_v23 = vpop.f32.mrf.mxu2  ;;  %v488_v26 = vpop.f32.mrf.mxu1 }
 0x125   : > { %v562_v10 = vpop.f32.mrf.mxu3 }
 0x126   : > { %v563_v24 = vadd.f32 %v562_v10, %v388_v18 }
 0x12b   : > { %v582_v31 = vpop.f32.mrf.mxu0 }
 0x12c   : > { %v622_v27 = vpop.f32.mrf.mxu2  ;;  %v602_v32 = vpop.f32.mrf.mxu1  ;;  %v583_v33 = vadd.f32 %v582_v31, %v408_v22 }
 0x12d   : > { %v642_v28 = vpop.f32.mrf.mxu3  ;;  %v623_v29 = vadd.f32 %v622_v27, %v448_v21  ;;  %v603_v34 = vadd.f32 %v602_v32, %v428_v20 }
 0x12e   : > { %v643_v30 = vadd.f32 %v642_v28, %v468_v25 }
 0x133   : > { %v662_v39 = vpop.f32.mrf.mxu0 }
 0x134   : > { %v736_v35 = vpop.f32.mrf.mxu2  ;;  %v682_v40 = vpop.f32.mrf.mxu1  ;;  %v663_v41 = vadd.f32 %v662_v39, %v488_v26 }
 0x135   : > { %v756_v36 = vpop.f32.mrf.mxu3  ;;  %v859_v37 = vadd.f32 %v736_v35, %v563_v24  ;;  %v683_v42 = vadd.f32 %v682_v40, %v508_v23 }
 0x136   : > { %v860_v38 = vadd.f32 %v756_v36, %v583_v33 }
 0x13b   : > { %v776_v47 = vpop.f32.mrf.mxu0 }
 0x13c   : > { %v816_v43 = vpop.f32.mrf.mxu2  ;;  %v796_v48 = vpop.f32.mrf.mxu1  ;;  %v861_v49 = vadd.f32 %v776_v47, %v603_v34 }
 0x13d   : > { %v836_v44 = vpop.f32.mrf.mxu3  ;;  %v863_v45 = vadd.f32 %v816_v43, %v643_v30  ;;  %v862_v50 = vadd.f32 %v796_v48, %v623_v29  ;;  %v1940_v43 = vpop.permute.xlu2 %1939 }
 0x13e   : > { %v864_v46 = vadd.f32 %v836_v44, %v663_v41 }
 0x143   : > { %v856_v53 = vpop.f32.mrf.mxu0 }
 0x144   : > { %v937_v51 = vpop.f32.mrf.mxu2  ;;  %v917_v54 = vpop.f32.mrf.mxu1  ;;  %v865_v55 = vadd.f32 %v856_v53, %v683_v42 }
 0x145   : > { %v957_v52 = vpop.f32.mrf.mxu3  ;;  %v1041_v22 = vadd.f32 %v937_v51, %v860_v38  ;;  %v1040_v23 = vadd.f32 %v917_v54, %v859_v37 }
 0x146   : > { %v1042_v18 = vadd.f32 %v957_v52, %v861_v49  ;;  %v1949_v52 = vld [vmem:[%s2821_s5] sm:$0xff] }
 0x14b   : > { %v977_v58 = vpop.f32.mrf.mxu0 }
 0x14c   : > { %v1017_v56 = vpop.f32.mrf.mxu2  ;;  %v997_v59 = vpop.f32.mrf.mxu1  ;;  %v1043_v28 = vadd.f32 %v977_v58, %v862_v50  ;;  %v2719_v58 = vperm.slane %v1949_v52, 0 }
 0x14d   : > { %v1037_v57 = vpop.f32.mrf.mxu3  ;;  %v1045_v42 = vadd.f32 %v1017_v56, %v864_v46  ;;  %v1044_v38 = vadd.f32 %v997_v59, %v863_v45 }
 0x14e   : > { %v1046_v36 = vadd.f32 %v1037_v57, %v865_v55 }
 0x153   : > { %v1067_v62 = vpop.f32.mrf.mxu0 }
 0x154   : > { %v1107_v60 = vpop.f32.mrf.mxu2  ;;  %v1087_v63 = vpop.f32.mrf.mxu1  ;;  %v1190_v29 = vadd.f32 %v1067_v62, %v1040_v23 }
 0x155   : > { %v1127_v61 = vpop.f32.mrf.mxu3  ;;  %v1192_v25 = vadd.f32 %v1107_v60, %v1042_v18  ;;  %v1191_v30 = vadd.f32 %v1087_v63, %v1041_v22  ;;  %v2721_v60 = vperm.slane %v1949_v52, 1 }
 0x156   : > { %v1193_v32 = vadd.f32 %v1127_v61, %v1043_v28 }
 0x15b   : > { %v1147_v2 = vpop.f32.mrf.mxu0 }
 0x15c   : > { %v1187_v0 = vpop.f32.mrf.mxu2  ;;  %v1167_v3 = vpop.f32.mrf.mxu1  ;;  %v1194_v53 = vadd.f32 %v1147_v2, %v1044_v38 }
 0x15d   : > { %v1264_v1 = vpop.f32.mrf.mxu3  ;;  %v1196_v44 = vadd.f32 %v1187_v0, %v1046_v36  ;;  %v1195_v54 = vadd.f32 %v1167_v3, %v1045_v42  ;;  %v2723_v0 = vperm.slane %v1949_v52, 2 }
 0x15e   : > { %v1387_v33 = vadd.f32 %v1264_v1, %v1190_v29 }
 0x163   : > { %v1284_v13 = vpop.f32.mrf.mxu0 }
 0x164   : > { %v1324_v4 = vpop.f32.mrf.mxu2  ;;  %v1304_v5 = vpop.f32.mrf.mxu1  ;;  %v1388_v34 = vadd.f32 %v1284_v13, %v1191_v30 }
 0x165   : > { %v1344_v9 = vpop.f32.mrf.mxu3  ;;  %v1389_v31 = vadd.f32 %v1304_v5, %v1192_v25  ;;  %v1390_v39 = vadd.f32 %v1324_v4, %v1193_v32 }
 0x166   : > { %v1391_v61 = vadd.f32 %v1344_v9, %v1194_v53 }
 0x16b   : > { %v1364_v8 = vpop.f32.mrf.mxu0 }
 0x16c   : > { %v1445_v6 = vpop.f32.mrf.mxu2  ;;  %v1384_v16 = vpop.f32.mrf.mxu1  ;;  %v1392_v62 = vadd.f32 %v1364_v8, %v1195_v54 }
 0x16d   : > { %v1465_v7 = vpop.f32.mrf.mxu3  ;;  %v1568_v40 = vadd.f32 %v1445_v6, %v1387_v33  ;;  %v1393_v63 = vadd.f32 %v1384_v16, %v1196_v44 }
 0x16e   : > { %v1569_v41 = vadd.f32 %v1465_v7, %v1388_v34 }
 0x173   : > { %v1485_v12 = vpop.f32.mrf.mxu0 }
 0x174   : > { %v1525_v11 = vpop.f32.mrf.mxu2  ;;  %v1505_v14 = vpop.f32.mrf.mxu1  ;;  %v1570_v35 = vadd.f32 %v1485_v12, %v1389_v31  ;;  %v2735_v12 = vperm.slane %v1949_v52, 3  ;;  %v2755_v31 = vperm.slane %v1949_v52, 6 }
 0x175   : > { %v1545_v19 = vpop.f32.mrf.mxu3  ;;  %v1571_v47 = vadd.f32 %v1505_v14, %v1390_v39  ;;  %v1572_v6 = vadd.f32 %v1525_v11, %v1391_v61  ;;  %v2741_v11 = vperm.slane %v1949_v52, 4 }
 0x176   : > { %v1573_v13 = vadd.f32 %v1545_v19, %v1392_v62 }
 0x17b   : > { %v1565_v20 = vpop.f32.mrf.mxu0 }
 0x17c   : > { %v1646_v15 = vpop.f32.mrf.mxu2  ;;  %v1626_v21 = vpop.f32.mrf.mxu1  ;;  %v1574_v5 = vadd.f32 %v1565_v20, %v1393_v63 }
 0x17d   : > { %v1666_v17 = vpop.f32.mrf.mxu3  ;;  %v1750_v48 = vadd.f32 %v1646_v15, %v1569_v41  ;;  %v1749_v49 = vadd.f32 %v1626_v21, %v1568_v40 }
 0x17e   : > { %v1751_v37 = vadd.f32 %v1666_v17, %v1570_v35 }
 0x183   : > { %v1686_v26 = vpop.f32.mrf.mxu0 }
 0x184   : > { %v1726_v10 = vpop.f32.mrf.mxu2  ;;  %v1706_v27 = vpop.f32.mrf.mxu1  ;;  %v1752_v45 = vadd.f32 %v1686_v26, %v1571_v47 }
 0x185   : > { %v1746_v24 = vpop.f32.mrf.mxu3  ;;  %v1754_v8 = vadd.f32 %v1726_v10, %v1573_v13  ;;  %v1753_v14 = vadd.f32 %v1706_v27, %v1572_v6  ;;  %v2747_v27 = vperm.slane %v1949_v52, 5 }
 0x186   : > { %v1755_v16 = vadd.f32 %v1746_v24, %v1574_v5 }
 0x18b   : > { %v1807_v57 = vpop.f32.mrf.mxu0 }
 0x18c   : > { %v1847_v50 = vpop.f32.mrf.mxu2  ;;  %v1827_v46 = vpop.f32.mrf.mxu1  ;;  %v1930_v56 = vadd.f32 %v1807_v57, %v1749_v49 }
 0x18d   : > { %v1867_v51 = vpop.f32.mrf.mxu3  ;;  %v1932_v55 = vadd.f32 %v1847_v50, %v1751_v37  ;;  %v1931_v59 = vadd.f32 %v1827_v46, %v1750_v48 }
 0x18e   : > { %v1933_v1 = vadd.f32 %v1867_v51, %v1752_v45  ;;  %v2725_v4 = vadd.f32 %v1940_v43, %v1930_v56 }
 0x18f   : > { %v2727_v2 = vadd.f32 %v1940_v43, %v1931_v59  ;;  %v2729_v3 = vadd.f32 %v1940_v43, %v1932_v55 }
 0x190   : > { %v1965_v7 = vmul.f32 %v2719_v58, %v2725_v4  ;;  %v2739_v18 = vadd.f32 %v1940_v43, %v1933_v1 }
 0x191   : > { %v1966_v9 = vmul.f32 %v2721_v60, %v2727_v2  ;;  %v1967_v15 = vmul.f32 %v2723_v0, %v2729_v3 }
 0x192   : > { %v1968_v28 = vmul.f32 %v2735_v12, %v2739_v18 }
 0x193   : > { %v1972_v17 = vadd.f32 %v1966_v9, %v1965_v7  ;;  %v1887_v19 = vpop.f32.mrf.mxu0 }
 0x194   : > { %v1927_v21 = vpop.f32.mrf.mxu2  ;;  %v1907_v20 = vpop.f32.mrf.mxu1  ;;  %v1934_v25 = vadd.f32 %v1887_v19, %v1753_v14 }
 0x195   : > { %v1973_v22 = vadd.f32 %v1972_v17, %v1967_v15  ;;  %v1936_v23 = vadd.f32 %v1927_v21, %v1755_v16  ;;  %v1935_v26 = vadd.f32 %v1907_v20, %v1754_v8  ;;  %v2011_v20 = vld [vmem:[%s283_s7] sm:$0xff] }
 0x196   : > { %v2743_v10 = vadd.f32 %v1940_v43, %v1934_v25 }
 0x197   : > { %v2745_v24 = vadd.f32 %v1940_v43, %v1935_v26  ;;  %v2751_v29 = vadd.f32 %v1940_v43, %v1936_v23  ;;  %v1974_v32 = vadd.f32 %v1973_v22, %v1968_v28 }
 0x198   : > { %v1969_v30 = vmul.f32 %v2741_v11, %v2743_v10 }
 0x199   : > { %v1970_v33 = vmul.f32 %v2747_v27, %v2745_v24  ;;  %v1971_v35 = vmul.f32 %v2755_v31, %v2751_v29 }
 0x19a   : > { %v1975_v34 = vadd.f32 %v1974_v32, %v1969_v30 }
 0x19c   : > { %v1976_v36 = vadd.f32 %v1975_v34, %v1970_v33 }
 0x19e   : > { %v1977_v39 = vadd.f32 %v1976_v36, %v1971_v35 }
 0x1a0   : > { %1978 = vadd.xlane.f32.xlu0 %v1977_v39 }
 0x213   : > { %v1979_v40 = vpop.xlane.xlu0 %1978 }
 0x214   : > { %v1980_v41 = vmul.f32 0.001953125, %v1979_v40 }
 0x216   : > { %v1981_v42 = vmul.f32 %v1980_v41, %v2719_v58  ;;  %v1982_v38 = vmul.f32 %v1980_v41, %v2721_v60  ;;  %v1983_v37 = vmul.f32 %v1980_v41, %v2723_v0  ;;  %v1984_v43 = vmul.f32 %v1980_v41, %v2735_v12 }
 0x217   : > { %v1985_v44 = vmul.f32 %v1980_v41, %v2741_v11  ;;  %v1986_v50 = vmul.f32 %v1980_v41, %v2747_v27  ;;  %v1987_v54 = vmul.f32 %v1980_v41, %v2755_v31 }
 0x218   : > { %v1988_v47 = vsub.f32 %v1965_v7, %v1981_v42  ;;  %v1989_v48 = vsub.f32 %v1966_v9, %v1982_v38  ;;  %v1990_v49 = vsub.f32 %v1967_v15, %v1983_v37  ;;  %v1991_v51 = vsub.f32 %v1968_v28, %v1984_v43  ;;  %v2024_v28 = vld [vmem:[%s287_s13] sm:$0xff] }
 0x219   : > { %v1992_v55 = vsub.f32 %v1969_v30, %v1985_v44  ;;  %v1993_v45 = vsub.f32 %v1970_v33, %v1986_v50  ;;  %v1994_v61 = vsub.f32 %v1971_v35, %v1987_v54 }
 0x21a   : > { %v1995_v52 = vmul.f32 %v1988_v47, %v1988_v47  ;;  %v1996_v53 = vmul.f32 %v1989_v48, %v1989_v48  ;;  %v1997_v57 = vmul.f32 %v1990_v49, %v1990_v49  ;;  %v1998_v56 = vmul.f32 %v1991_v51, %v1991_v51 }
 0x21b   : > { %v1999_v62 = vmul.f32 %v1992_v55, %v1992_v55  ;;  %v2000_v1 = vmul.f32 %v1993_v45, %v1993_v45  ;;  %v2001_v5 = vmul.f32 %v1994_v61, %v1994_v61 }
 0x21c   : > { %v2002_v46 = vadd.f32 %v1996_v53, %v1995_v52 }
 0x21e   : > { %v2003_v59 = vadd.f32 %v2002_v46, %v1997_v57 }
 0x220   : > { %v2004_v63 = vadd.f32 %v2003_v59, %v1998_v56 }
 0x222   : > { %v2005_v13 = vadd.f32 %v2004_v63, %v1999_v62 }
 0x224   : > { %v2006_v6 = vadd.f32 %v2005_v13, %v2000_v1 }
 0x226   : > { %v2007_v7 = vadd.f32 %v2006_v6, %v2001_v5 }
 0x228   : > { %2008 = vadd.xlane.f32.xlu1 %v2007_v7 }
 0x29b   : > { %v2009_v9 = vpop.xlane.xlu1 %2008 }
 0x29c   : > { %v2010_v8 = vmul.f32 0.001953125, %v2009_v9 }
 0x29e   : > { %v2012_v16 = vadd.f32 1e-05, %v2010_v8 }
 0x2a0   : > { %2397 = vrsqrt.f32 %v2012_v16  ;;  %vm2019_vm10 = vweird.f32 %v2012_v16 }
 0x2a6   : > { %v2398_v14 = vpop.eup %2397 }
 0x2a7   : > { %v2014_v15 = vmul.f32 %v2398_v14, %v2012_v16  ;;  %vm2020_vm9 = vweird.f32 %v2398_v14 }
 0x2a8   : > { %vm2021_vm11 = vmor %vm2019_vm10, %vm2020_vm9 }
 0x2a9   : > { %v2015_v17 = vmul.f32 %v2398_v14, %v2014_v15 }
 0x2ab   : > { %v2016_v21 = vmul.f32 0.5, %v2015_v17 }
 0x2ad   : > { %v2017_v19 = vsub.f32 1.5, %v2016_v21 }
 0x2af   : > { %v2018_v22 = vmul.f32 %v2398_v14, %v2017_v19 }
 0x2b1   : > { %v2022_v23 = vsel %vm2021_vm11, %v2398_v14, %v2018_v22 }
 0x2b2   : > { %v2023_v25 = vmul.f32 %v2022_v23, %v2011_v20 }
 0x2b4   : > { %2029 = vperm.xlu2 %2395, %v2023_v25   ;;  %v2025_v26 = vmul.f32 %v2023_v25, %v1980_v41 }
 0x2b6   : > { %v2026_v30 = vsub.f32 %v2024_v28, %v2025_v26 }
 0x2bc   : > { %2041 = vperm.xlu2 %2395, %v2026_v30  }
 0x30e   : > { %v2030_v32 = vpop.permute.xlu2 %2029 }
 0x30f   : > { %v2032_v33 = vmul.f32 %v2030_v32, %v2725_v4  ;;  %v2033_v34 = vmul.f32 %v2030_v32, %v2727_v2  ;;  %v2034_v35 = vmul.f32 %v2030_v32, %v2729_v3  ;;  %v2035_v36 = vmul.f32 %v2030_v32, %v2739_v18 }
 0x310   : > { %v2036_v39 = vmul.f32 %v2030_v32, %v2743_v10  ;;  %v2037_v40 = vmul.f32 %v2030_v32, %v2745_v24  ;;  %v2038_v41 = vmul.f32 %v2030_v32, %v2751_v29 }
 0x316   : > { %v2042_v42 = vpop.permute.xlu2 %2041 }
 0x317   : > { %v2044_v38 = vadd.f32 %v2042_v42, %v2032_v33  ;;  %v2045_v37 = vadd.f32 %v2042_v42, %v2033_v34  ;;  %v2046_v43 = vadd.f32 %v2042_v42, %v2034_v35  ;;  %v2047_v44 = vadd.f32 %v2042_v42, %v2035_v36 }
 0x318   : > { %v2048_v47 = vadd.f32 %v2042_v42, %v2036_v39  ;;  %v2049_v48 = vadd.f32 %v2042_v42, %v2037_v40  ;;  %v2050_v4 = vadd.f32 %v2042_v42, %v2038_v41 }
 0x319   : > { %v2051_v49 = vmax.f32 %v2044_v38, 0.0  ;;  %v2052_v2 = vmax.f32 %v2045_v37, 0.0  ;;  %v2053_v50 = vmax.f32 %v2046_v43, 0.0  ;;  %v2054_v3 = vmax.f32 %v2047_v44, 0.0 }
 0x31a   : > { %v2055_v51 = vmax.f32 %v2048_v47, 0.0  ;;  %v2056_v18 = vmax.f32 %v2049_v48, 0.0  ;;  %v2057_v52 = vmax.f32 %v2050_v4, 0.0 }
 0x31b   : > { %v2058_v10 = vmul.f32 %v2051_v49, %v2719_v58  ;;  %v2059_v24 = vmul.f32 %v2052_v2, %v2721_v60  ;;  %v2060_v29 = vmul.f32 %v2053_v50, %v2723_v0  ;;  %v2061_v53 = vmul.f32 %v2054_v3, %v2735_v12 }
 0x31c   : > { %v2062_v54 = vmul.f32 %v2055_v51, %v2741_v11  ;;  %v2063_v55 = vmul.f32 %v2056_v18, %v2747_v27  ;;  %v2064_v57 = vmul.f32 %v2057_v52, %v2755_v31 }
 0x31d   : > { %2065 = vst [vmem:[#allocation2] sm:$0xff] %v2058_v10 }
 0x31e   : > { %2066 = vst [vmem:[#allocation2 + $0x18] sm:$0xff] %v2059_v24 }
 0x31f   : > { %2067 = vst [vmem:[#allocation2 + $0x10] sm:$0xff] %v2060_v29 }
 0x320   : > { %2068 = vst [vmem:[#allocation2 + $0x20] sm:$0xff] %v2061_v53 }
 0x321   : > { %2069 = vst [vmem:[#allocation2 + $0x28] sm:$0xff] %v2062_v54 }
 0x322   : > { %2070 = vst [vmem:[#allocation2 + $0x40] sm:$0xff] %v2063_v55 }
 0x323   : > { %2071 = vst [vmem:[#allocation2 + $0x38] sm:$0xff] %v2064_v57 }
 0x324   : > { %2072 = vst [vmem:[%s2822_s6] sm:$0xff] %v2058_v10 }
 0x325   : > { %2073 = vst [vmem:[%s2822_s6 + $0x8] sm:$0xff] %v2059_v24 }
 0x326   : > { %2074 = vst [vmem:[%s2822_s6 + $0x10] sm:$0xff] %v2060_v29 }
 0x327   : > { %2075 = vst [vmem:[%s2822_s6 + $0x18] sm:$0xff] %v2061_v53 }
 0x328   : > { %2076 = vst [vmem:[%s2822_s6 + $0x20] sm:$0xff] %v2062_v54 }
 0x329   : > { %2077 = vst [vmem:[%s2822_s6 + $0x28] sm:$0xff] %v2063_v55 }
 0x32a   : > { %2078 = vst [vmem:[%s2822_s6 + $0x30] sm:$0xff] %v2064_v57 }
 0x32b PF: > { %s16_s21 = sadd.s32 1, %s2405_s21  }
 0x32c   : > { %p13_p5 = scmp.ge.s32.totalorder %s16_s21, 4  }
 0x32e   :  { %15 = sbr.rel (!%p13_p5) target bundleno = 1 (0x1), region = 83 }

</bundles_post_ra>
